<compile_context>
chip_gen: v5e
topology: v5e:2x2
jax: 0.10.0
libtpu: 0.0.40
codegen_flags: <defaults>
</compile_context>

<pallas_src>
import functools

import jax
import jax.numpy as jnp
from jax.experimental import pallas as pl
from jax.experimental.pallas import tpu as pltpu


def _cdiv(a, b):
    return -(-a // b)


def _round_up(x, m):
    return _cdiv(x, m) * m


def _make_focal_kernel(num_classes, pack, gamma, has_alpha):
    """Builds the per-tile kernel, specialized on (C, pack, gamma, alpha?)."""
    c = num_classes
    g = float(gamma)

    def kernel(x_ref, xt_ref, *rest):
        # x_ref  : (TR, pack*C) packed logits (pack original rows per lane row)
        # xt_ref : (TR, pack) f32 target logits (gathered in the wrapper)
        # a_ref  : (TR, pack) f32 alpha[target] (only when has_alpha)
        # loss   : (TR, pack) f32 per-row focal loss
        if has_alpha:
            a_ref, loss_ref = rest
        else:
            (loss_ref,) = rest

        _, w = x_ref.shape
        x = x_ref[...].astype(jnp.float32)                 # (TR, W), full-lane

        # Packed-row max shift (see module docstring for the range assumption).
        m = jnp.max(x, axis=-1, keepdims=True)             # (TR, 1)
        e = jnp.exp(x - m)                                 # (TR, W), EUP full-lane

        if pack == 1:
            sum_e = jnp.sum(e, axis=-1, keepdims=True)     # (TR, 1)
        else:
            # Per-original-row (segment) sum of exp via a constant 0/1 selector
            # matrix on the otherwise-idle MXU -- the single remaining matmul.
            lane = jax.lax.broadcasted_iota(jnp.int32, (w, pack), 0)
            seg = jax.lax.broadcasted_iota(jnp.int32, (w, pack), 1)
            gmat = ((lane >= seg * c) & (lane < (seg + 1) * c)).astype(jnp.float32)
            sum_e = jnp.dot(e, gmat, preferred_element_type=jnp.float32)  # (TR, pack)

        sum_e = jnp.maximum(sum_e, 1e-37)     # guard log(0) if a segment underflows
        log_sum = jnp.log(sum_e)              # (TR, pack)

        shifted_t = xt_ref[...] - m           # x_target - m          (TR, pack)
        log_p = shifted_t - log_sum           # log_softmax at target (TR, pack)
        p = jnp.exp(log_p)
        base = jnp.maximum(1.0 - p, 0.0)      # clamp: p may round slightly above 1

        if g == 0.0:
            focusing = jnp.ones_like(base)
        elif g == 1.0:
            focusing = base                   # no pow for the common gamma = 1
        elif g == float(int(g)) and 1 < int(g) <= 4:
            focusing = base
            for _ in range(int(g) - 1):       # small integer gamma: multiplies
                focusing = focusing * base
        else:
            focusing = jnp.power(base, g)     # general fallback

        loss = focusing * (-log_p)            # = -(1 - p)^gamma * log_p
        if has_alpha:
            loss = a_ref[...] * loss
        loss_ref[...] = loss

    return kernel


def focal_loss(inputs, targets, alpha=None, gamma=1.0, reduction="mean",
               *, tile_rows=8192):
    """Pallas TPU focal loss matching FocalLoss.forward (span_aste/utils.py).

    inputs : (N, C) float logits (float32 or bfloat16; bf16 is read as-is and
             upcast on-chip)
    targets: (N,)   int class indices
    alpha  : optional (C,) per-class weights
    """
    n, c = inputs.shape
    targets = targets.reshape(-1).astype(jnp.int32)

    # Lane packing: pack original rows so one packed row fills the 128-lane vreg.
    pack = 128 // c if (c <= 128 and 128 % c == 0) else 1
    w = pack * c

    r = _cdiv(n, pack)                # number of packed row-groups
    n_pack = r * pack

    # --- wrapper-side gathers: one fused one-hot select+sum pass, tiny (N,)
    # --- outputs (no risky minor-dim gather HLO, no in-kernel selector matmuls)
    onehot = jax.lax.broadcasted_iota(jnp.int32, (n, c), 1) == targets[:, None]
    x_t = jnp.sum(jnp.where(onehot, inputs.astype(jnp.float32), 0.0), axis=-1)
    has_alpha = alpha is not None
    if has_alpha:
        a_vec = jnp.asarray(alpha, jnp.float32).reshape(-1)
        a_row = jnp.sum(jnp.where(onehot, a_vec[None, :], 0.0), axis=-1)

    # --- packed views (free row-major reshapes; no data movement) ---
    if n_pack != n:
        # Rare fallback: N not a multiple of the packing factor.  This is the
        # only case in which the logits get copied (jnp.pad of <= pack-1 rows).
        x2d = jnp.pad(inputs, ((0, n_pack - n), (0, 0)))
        x_t = jnp.pad(x_t, (0, n_pack - n))
        if has_alpha:
            a_row = jnp.pad(a_row, (0, n_pack - n))
    else:
        x2d = inputs
    x_packed = x2d.reshape(r, w)
    xt_packed = x_t.reshape(r, pack)
    if has_alpha:
        a_packed = a_row.reshape(r, pack)

    # --- tile size: big enough to amortize the ~0.35us grid-step overhead,
    # --- small enough for the v5e 16 MiB scoped-VMEM default, and >=4 grid
    # --- steps for mid/large inputs so v7x's two TensorCores both get work.
    tile_target = max(8, int(tile_rows))
    if r <= tile_target:
        tile_r = r                              # single block == whole array
    else:
        tile_r = min(tile_target, _round_up(_cdiv(r, 4), 8))
    grid = _cdiv(r, tile_r)
    # The last block may be ragged (r % tile_r != 0): Pallas masks the
    # out-of-bounds rows on store, all math is row-local, and the wrapper only
    # reads the first N rows, so no padding of the logits to the grid is needed.

    kernel = _make_focal_kernel(c, pack, float(gamma), has_alpha)

    in_specs = [
        pl.BlockSpec((tile_r, w), lambda i: (i, 0)),       # packed logits
        pl.BlockSpec((tile_r, pack), lambda i: (i, 0)),    # target logits x_t
    ]
    operands = [x_packed, xt_packed]
    if has_alpha:
        in_specs.append(pl.BlockSpec((tile_r, pack), lambda i: (i, 0)))
        operands.append(a_packed)

    loss_packed = pl.pallas_call(
        kernel,
        out_shape=jax.ShapeDtypeStruct((r, pack), jnp.float32),
        grid_spec=pltpu.PrefetchScalarGridSpec(
            num_scalar_prefetch=0,
            grid=(grid,),
            in_specs=in_specs,
            out_specs=pl.BlockSpec((tile_r, pack), lambda i: (i, 0)),
        ),
        compiler_params=pltpu.CompilerParams(
            # Independent tiles: lets v7x's two TensorCores split the grid.
            dimension_semantics=("parallel",),
        ),
    )(*operands)

    loss = loss_packed.reshape(n_pack)[:n]      # drop padded rows exactly
    if reduction == "mean":
        return loss.mean()
    if reduction == "sum":
        return loss.sum()
    return loss                                 # reduction == 'none'


def _focal_loss_ref(inputs, targets, alpha=None, gamma=1.0, reduction="mean"):
    log_probs = jax.nn.log_softmax(inputs.astype(jnp.float32), axis=-1)
    probs = jnp.exp(log_probs)
    idx = jnp.arange(targets.shape[0])
    log_p = log_probs[idx, targets]
    p = probs[idx, targets]
    alpha_factor = 1.0 if alpha is None else jnp.asarray(alpha, jnp.float32)[targets]
    loss = -alpha_factor * (1.0 - p) ** gamma * log_p
    if reduction == "mean":
        return loss.mean()
    if reduction == "sum":
        return loss.sum()
    return loss


if __name__ == "__main__":
    key = jax.random.PRNGKey(0)
    k1, k2, k3 = jax.random.split(key, 3)

    # Small shapes consistent with the module: 64 flattened rows, 16 classes.
    N, C = 64, 16
    inputs = jax.random.normal(k1, (N, C), jnp.float32)
    targets = jax.random.randint(k2, (N,), 0, C, jnp.int32)
    alpha = jax.random.uniform(k3, (C,), jnp.float32, 0.5, 1.5)

    out = jax.block_until_ready(focal_loss(inputs, targets, alpha=alpha, gamma=1.0))
    ref = _focal_loss_ref(inputs, targets, alpha=alpha, gamma=1.0)
    assert jnp.allclose(out, ref, rtol=1e-4, atol=1e-5), (out, ref)

    # Ragged N (exercises the pad-to-pack fallback), no alpha, integer gamma > 1.
    N2 = 53
    inputs2 = jax.random.normal(k1, (N2, C), jnp.float32)
    targets2 = jax.random.randint(k2, (N2,), 0, C, jnp.int32)
    out2 = jax.block_until_ready(focal_loss(inputs2, targets2, alpha=None, gamma=2.0))
    ref2 = _focal_loss_ref(inputs2, targets2, alpha=None, gamma=2.0)
    assert jnp.allclose(out2, ref2, rtol=1e-4, atol=1e-5), (out2, ref2)

    # bf16 logits read as-is (upcast on-chip) and per-row losses (reduction='none').
    inputs3 = inputs.astype(jnp.bfloat16)
    out3 = jax.block_until_ready(
        focal_loss(inputs3, targets, alpha=None, gamma=1.0, reduction="none"))
    ref3 = _focal_loss_ref(inputs3.astype(jnp.float32), targets, alpha=None,
                           gamma=1.0, reduction="none")
    assert jnp.allclose(out3, ref3, rtol=1e-3, atol=1e-5), (out3, ref3)

    print("KERNEL_OK")
</pallas_src>

<mosaic_0001>
module attributes {stable_mosaic.version = 11 : i64} {
  func.func @kernel(%arg0: i32, %arg1: memref<8x128xf32, #tpu.memory_space<vmem>>, %arg2: memref<8x8xf32, #tpu.memory_space<vmem>>, %arg3: memref<8x8xf32, #tpu.memory_space<vmem>>, %arg4: memref<8x8xf32, #tpu.memory_space<vmem>>) attributes {dimension_semantics = [#tpu.dimension_semantics<parallel>], iteration_bounds = array<i64: 1>, scalar_prefetch = 0 : i64, scratch_operands = 0 : i64, tpu.core_type = #tpu.core_type<tc>, window_params = [{transform_indices = @transform_0, window_bounds = array<i64: 8, 128>}, {transform_indices = @transform_1, window_bounds = array<i64: 8, 8>}, {transform_indices = @transform_2, window_bounds = array<i64: 8, 8>}, {transform_indices = @transform_3, window_bounds = array<i64: 8, 8>}]} {
    %c0 = arith.constant 0 : index
    %c0_0 = arith.constant 0 : index
    %0 = vector.load %arg1[%c0, %c0_0] : memref<8x128xf32, #tpu.memory_space<vmem>>, vector<8x128xf32>
    %cst = arith.constant dense<0xFF800000> : vector<8xf32>
    %1 = vector.multi_reduction <maximumf>, %0, %cst [1] : vector<8x128xf32> to vector<8xf32>
    %2 = vector.shape_cast %1 : vector<8xf32> to vector<8x1xf32>
    %3 = vector.broadcast %2 : vector<8x1xf32> to vector<8x128xf32>
    %4 = arith.subf %0, %3 : vector<8x128xf32>
    %5 = math.exp %4 : vector<8x128xf32>
    %6 = tpu.iota {dimensions = array<i32: 0>} : vector<128x8xi32>
    %7 = tpu.iota {dimensions = array<i32: 1>} : vector<128x8xi32>
    %c16_i32 = arith.constant 16 : i32
    %8 = vector.broadcast %c16_i32 : i32 to vector<128x8xi32>
    %9 = arith.muli %7, %8 : vector<128x8xi32>
    %10 = arith.cmpi sge, %6, %9 : vector<128x8xi32>
    %c1_i32 = arith.constant 1 : i32
    %11 = vector.broadcast %c1_i32 : i32 to vector<128x8xi32>
    %12 = arith.addi %7, %11 : vector<128x8xi32>
    %c16_i32_1 = arith.constant 16 : i32
    %13 = vector.broadcast %c16_i32_1 : i32 to vector<128x8xi32>
    %14 = arith.muli %12, %13 : vector<128x8xi32>
    %15 = arith.cmpi slt, %6, %14 : vector<128x8xi32>
    %16 = arith.andi %10, %15 : vector<128x8xi1>
    %17 = arith.extui %16 : vector<128x8xi1> to vector<128x8xi32>
    %18 = arith.sitofp %17 : vector<128x8xi32> to vector<128x8xf32>
    %cst_2 = arith.constant dense<0.000000e+00> : vector<8x8xf32>
    %19 = tpu.matmul %5, %18, %cst_2 {dimension_numbers = #tpu.dot_dimension_numbers<[1], [0], [0], [1], [0, 0, 1, 1], [], []>} : vector<8x128xf32>, vector<128x8xf32>, vector<8x8xf32> -> vector<8x8xf32>
    %cst_3 = arith.constant 9.99999991E-38 : f32
    %20 = vector.broadcast %cst_3 : f32 to vector<8x8xf32>
    %21 = arith.maximumf %19, %20 : vector<8x8xf32>
    %22 = math.log %21 : vector<8x8xf32>
    %c0_4 = arith.constant 0 : index
    %c0_5 = arith.constant 0 : index
    %23 = vector.load %arg2[%c0_4, %c0_5] : memref<8x8xf32, #tpu.memory_space<vmem>>, vector<8x8xf32>
    %24 = vector.broadcast %2 : vector<8x1xf32> to vector<8x8xf32>
    %25 = arith.subf %23, %24 : vector<8x8xf32>
    %26 = arith.subf %25, %22 : vector<8x8xf32>
    %27 = math.exp %26 : vector<8x8xf32>
    %cst_6 = arith.constant 1.000000e+00 : f32
    %28 = vector.broadcast %cst_6 : f32 to vector<8x8xf32>
    %29 = arith.subf %28, %27 : vector<8x8xf32>
    %cst_7 = arith.constant 0.000000e+00 : f32
    %30 = vector.broadcast %cst_7 : f32 to vector<8x8xf32>
    %31 = arith.maximumf %29, %30 : vector<8x8xf32>
    %cst_8 = arith.constant 0.000000e+00 : f32
    %32 = vector.broadcast %cst_8 : f32 to vector<8x8xf32>
    %33 = arith.subf %32, %26 : vector<8x8xf32>
    %34 = arith.mulf %31, %33 : vector<8x8xf32>
    %c0_9 = arith.constant 0 : index
    %c0_10 = arith.constant 0 : index
    %35 = vector.load %arg3[%c0_9, %c0_10] : memref<8x8xf32, #tpu.memory_space<vmem>>, vector<8x8xf32>
    %36 = arith.mulf %35, %34 : vector<8x8xf32>
    %c0_11 = arith.constant 0 : index
    %c0_12 = arith.constant 0 : index
    %37 = vector.load %arg4[%c0_11, %c0_12] : memref<8x8xf32, #tpu.memory_space<vmem>>, vector<8x8xf32>
    tpu.vector_store %arg4[%c0_11, %c0_12], %36 {strides = array<i32>} : memref<8x8xf32, #tpu.memory_space<vmem>>, vector<8x8xf32>,
    return
  }
  func.func @transform_0(%arg0: i32) -> (i32, i32) {
    %c0_i32 = arith.constant 0 : i32
    %c0_i32_0 = arith.constant 0 : i32
    return %arg0, %c0_i32 : i32, i32
  }
  func.func @transform_1(%arg0: i32) -> (i32, i32) {
    %c0_i32 = arith.constant 0 : i32
    %c0_i32_0 = arith.constant 0 : i32
    return %arg0, %c0_i32 : i32, i32
  }
  func.func @transform_2(%arg0: i32) -> (i32, i32) {
    %c0_i32 = arith.constant 0 : i32
    %c0_i32_0 = arith.constant 0 : i32
    return %arg0, %c0_i32 : i32, i32
  }
  func.func @transform_3(%arg0: i32) -> (i32, i32) {
    %c0_i32 = arith.constant 0 : i32
    %c0_i32_0 = arith.constant 0 : i32
    return %arg0, %c0_i32 : i32, i32
  }
}

</mosaic_0001>

<bundles_post_ra>
// kernel: tpu_custom_call.1
= control target key start
LH: loop header
LB: loop body
LE: loop exit
PB: predicated region body
PF: predicated region fallthrough
CT: control target
= control target key end

     0   :  { %8 = vsyncpa [#allocation3], 0  ;;  %s475_s0 = inlined_call_operand.hbm [shape: f32[8,128], index: 0, kind: input, shape index: {}]   ;;  %s476_s1 = inlined_call_operand.hbm [shape: f32[8,8], index: 1, kind: input, shape index: {}]   ;;  %s477_s2 = inlined_call_operand.hbm [shape: f32[8,8], index: 2, kind: input, shape index: {}]   ;;  %s478_s3 = inlined_call_operand.hbm [shape: f32[8,8], index: 3, kind: output, shape index: {}]  }
   0x1   :  { %9 = vsyncpa [#allocation6], 0  ;;  %s27_s14 = sshll.u32 %s476_s1, 4  ;;  %s28_s14 = int_to_ptr.hbm [resolvable:$true] %s27_s14 }
   0x2   :  { %10 = vsyncpa [#allocation4], 0  ;;  %s363_s15 = smov [#allocation5]   ;;  %s16_s19 = sshll.u32 %s475_s0, 4  ;;  %s17_s19 = int_to_ptr.hbm [resolvable:$true] %s16_s19 }
   0x3   :  { %s29_s16 = sshll.u32 %s363_s15, 4  ;;  %s364_s20 = smov [#allocation2]   ;;  %s30_s16 = int_to_ptr.vmem [resolvable:$true] %s29_s16 }
   0x4   :  { %32 = dma.hbm_to_vmem [thread:$0]  %s28_s14, 128, %s30_s16, [#allocation6]  }
   0x5   :  { %s18_s21 = sshll.u32 %s364_s20, 4  ;;  %s38_s24 = sshll.u32 %s477_s2, 4  ;;  %s19_s21 = int_to_ptr.vmem [resolvable:$true] %s18_s21  ;;  %s39_s24 = int_to_ptr.hbm [resolvable:$true] %s38_s24 }
   0x6   :  { %21 = dma.hbm_to_vmem [thread:$0]  %s17_s19, 128, %s19_s21, [#allocation3]  }
   0x7   :  { %s365_s1 = smov [#allocation7]  }
   0x8   :  { %s40_s25 = sshll.u32 %s365_s1, 4  ;;  %s41_s25 = int_to_ptr.vmem [resolvable:$true] %s40_s25 }
   0x9   :  { %43 = dma.hbm_to_vmem [thread:$0]  %s39_s24, 128, %s41_s25, [#allocation6]  }
   0xa   :  { %357 = dma.done.wait [#allocation3], 128  }
   0xb   :  { %358 = vsyncadd [#allocation3], 4294967168 }
   0xc   :  { %359 = dma.done.wait [#allocation6], 256  }
   0xd   :  { %360 = vsyncadd [#allocation6], 4294967040  ;;  %v62_v0 = vlaneseq  ;;  %v408_v10 = vld [vmem:[#allocation2] sm:$0xff]  ;;  %v366_v12 = vmov 1.0   ;;  %v187_v29 = vld [vmem:[#allocation5] sm:$0xff]  ;;  %s367_s0 = smov [#allocation8]  }
   0xe   :  { %57 = vmax.xlane.f32.xlu0 %v408_v10  ;;  %v196_v39 = vld [vmem:[#allocation7] sm:$0xff]  ;;  %s205_s2 = sshll.u32 %s367_s0, 4  ;;  %s207_s28 = sshll.u32 %s478_s3, 4  ;;  %s206_s2 = int_to_ptr.vmem [resolvable:$true] %s205_s2  ;;  %s208_s28 = int_to_ptr.hbm [resolvable:$true] %s207_s28 }
   0xf   :  { %v397_v1 = vshrl.u32 %v62_v0, 7  ;;  %v80_v2 = vand.u32 127, %v62_v0 }
  0x11   :  { %v78_v3 = vadd.s32 120, %v397_v1  ;;  %v400_v4 = vmul.u32 16, %v80_v2  ;;  %v98_v5 = vadd.s32 1, %v80_v2  ;;  %v77_v6 = vadd.s32 112, %v397_v1 }
  0x12   :  { %v76_v7 = vadd.s32 104, %v397_v1  ;;  %v75_v9 = vadd.s32 96, %v397_v1  ;;  %v74_v11 = vadd.s32 88, %v397_v1  ;;  %v73_v13 = vadd.s32 80, %v397_v1 }
  0x13   :  { %vm97_vm0 = vcmp.ge.s32.totalorder %v78_v3, %v400_v4  ;;  %v405_v8 = vmul.u32 16, %v98_v5  ;;  %vm96_vm1 = vcmp.ge.s32.totalorder %v77_v6, %v400_v4  ;;  %v72_v14 = vadd.s32 72, %v397_v1 }
  0x14   :  { %vm95_vm4 = vcmp.ge.s32.totalorder %v76_v7, %v400_v4  ;;  %vm94_vm8 = vcmp.ge.s32.totalorder %v75_v9, %v400_v4  ;;  %vm93_vm11 = vcmp.ge.s32.totalorder %v74_v11, %v400_v4  ;;  %vm92_vm14 = vcmp.ge.s32.totalorder %v73_v13, %v400_v4 }
  0x15   :  { %vm115_vm2 = vcmp.lt.s32.totalorder %v78_v3, %v405_v8  ;;  %vm114_vm3 = vcmp.lt.s32.totalorder %v77_v6, %v405_v8  ;;  %vm113_vm5 = vcmp.lt.s32.totalorder %v76_v7, %v405_v8  ;;  %vm112_vm9 = vcmp.lt.s32.totalorder %v75_v9, %v405_v8 }
  0x16   :  { %vm131_vm6 = vmand %vm97_vm0, %vm115_vm2  ;;  %vm111_vm12 = vcmp.lt.s32.totalorder %v74_v11, %v405_v8  ;;  %vm110_vm15 = vcmp.lt.s32.totalorder %v73_v13, %v405_v8  ;;  %v71_v15 = vadd.s32 64, %v397_v1  ;;  %vm109_vm2 = vcmp.lt.s32.totalorder %v72_v14, %v405_v8 }
  0x17   :  { %234 = vmatpush.msk.msra.mxu0 %vm131_vm6, %v366_v12  ;;  %vm130_vm7 = vmand %vm96_vm1, %vm114_vm3  ;;  %vm91_vm1 = vcmp.ge.s32.totalorder %v72_v14, %v400_v4  ;;  %v70_v16 = vadd.s32 56, %v397_v1  ;;  %v69_v17 = vadd.s32 48, %v397_v1  ;;  %v68_v18 = vadd.s32 40, %v397_v1 }
  0x18   :  { %vm129_vm10 = vmand %vm95_vm4, %vm113_vm5  ;;  %vm90_vm4 = vcmp.ge.s32.totalorder %v71_v15, %v400_v4  ;;  %vm108_vm5 = vcmp.lt.s32.totalorder %v71_v15, %v405_v8  ;;  %v67_v19 = vadd.s32 32, %v397_v1  ;;  %v66_v20 = vadd.s32 24, %v397_v1 }
  0x19   :  { %235 = vmatpush.msk.msra.mxu0 %vm130_vm7, %v366_v12  ;;  %vm128_vm13 = vmand %vm94_vm8, %vm112_vm9  ;;  %vm89_vm7 = vcmp.ge.s32.totalorder %v70_v16, %v400_v4  ;;  %vm107_vm8 = vcmp.lt.s32.totalorder %v70_v16, %v405_v8  ;;  %v65_v21 = vadd.s32 16, %v397_v1  ;;  %v64_v22 = vadd.s32 8, %v397_v1 }
  0x1a   :  { %vm127_vm0 = vmand %vm93_vm11, %vm111_vm12  ;;  %vm106_vm11 = vcmp.lt.s32.totalorder %v69_v17, %v405_v8 }
  0x1b   :  { %236 = vmatpush.msk.msra.mxu0 %vm129_vm10, %v366_v12  ;;  %vm126_vm3 = vmand %vm92_vm14, %vm110_vm15  ;;  %vm88_vm10 = vcmp.ge.s32.totalorder %v69_v17, %v400_v4  ;;  %vm87_vm14 = vcmp.ge.s32.totalorder %v68_v18, %v400_v4  ;;  %vm105_vm15 = vcmp.lt.s32.totalorder %v68_v18, %v405_v8 }
  0x1c   :  { %vm125_vm6 = vmand %vm91_vm1, %vm109_vm2  ;;  %vm86_vm1 = vcmp.ge.s32.totalorder %v67_v19, %v400_v4  ;;  %vm104_vm2 = vcmp.lt.s32.totalorder %v67_v19, %v405_v8 }
  0x1d   :  { %237 = vmatpush.msk.msra.mxu0 %vm128_vm13, %v366_v12  ;;  %vm124_vm9 = vmand %vm90_vm4, %vm108_vm5  ;;  %vm85_vm4 = vcmp.ge.s32.totalorder %v66_v20, %v400_v4  ;;  %vm103_vm5 = vcmp.lt.s32.totalorder %v66_v20, %v405_v8 }
  0x1e   :  { %vm123_vm12 = vmand %vm89_vm7, %vm107_vm8  ;;  %vm84_vm7 = vcmp.ge.s32.totalorder %v65_v21, %v400_v4  ;;  %vm102_vm8 = vcmp.lt.s32.totalorder %v65_v21, %v405_v8 }
  0x1f   :  { %238 = vmatpush.msk.msra.mxu0 %vm127_vm0, %v366_v12  ;;  %vm122_vm13 = vmand %vm88_vm10, %vm106_vm11  ;;  %vm100_vm11 = vcmp.lt.s32.totalorder %v397_v1, %v405_v8 }
  0x20   :  { %vm121_vm0 = vmand %vm87_vm14, %vm105_vm15 }
  0x21   :  { %239 = vmatpush.msk.msra.mxu0 %vm126_vm3, %v366_v12  ;;  %vm120_vm3 = vmand %vm86_vm1, %vm104_vm2 }
  0x22   :  { %vm118_vm10 = vmand %vm84_vm7, %vm102_vm8 }
  0x23   :  { %240 = vmatpush.msk.msra.mxu0 %vm125_vm6, %v366_v12  ;;  %vm119_vm6 = vmand %vm85_vm4, %vm103_vm5 }
  0x25   :  { %241 = vmatpush.msk.msra.mxu0 %vm124_vm9, %v366_v12  ;;  %vm82_vm9 = vcmp.ge.s32.totalorder %v397_v1, %v400_v4 }
  0x26   :  { %vm116_vm14 = vmand %vm82_vm9, %vm100_vm11 }
  0x27   :  { %242 = vmatpush.msk.msra.mxu0 %vm123_vm12, %v366_v12  ;;  %vm83_vm12 = vcmp.ge.s32.totalorder %v64_v22, %v400_v4 }
  0x29   :  { %243 = vmatpush.msk.msra.mxu0 %vm122_vm13, %v366_v12  ;;  %vm101_vm13 = vcmp.lt.s32.totalorder %v64_v22, %v405_v8 }
  0x2a   :  { %vm117_vm15 = vmand %vm83_vm12, %vm101_vm13 }
  0x2b   :  { %244 = vmatpush.msk.msra.mxu0 %vm121_vm0, %v366_v12  ;;  %vm198_vm0 = vcmask 64512  }
  0x2d   :  { %245 = vmatpush.msk.msra.mxu0 %vm120_vm3, %v366_v12 }
  0x2f   :  { %246 = vmatpush.msk.msra.mxu0 %vm119_vm6, %v366_v12 }
  0x31   :  { %247 = vmatpush.msk.msra.mxu0 %vm118_vm10, %v366_v12 }
  0x33   :  { %248 = vmatpush.msk.msra.mxu0 %vm117_vm15, %v366_v12 }
  0x35   :  { %249 = vmatpush.msk.msra.mxu0 %vm116_vm14, %v366_v12 }
  0x81   :  { %v58_v23 = vpop.xlane.xlu0 %57 }
  0x82   :  { %v59_v24 = vsub.f32 %v408_v10, %v58_v23  ;;  %v188_v31 = vsub.f32 %v187_v29, %v58_v23 }
  0x84   :  { %v60_v25 = vmul.f32 1.442695, %v59_v24 }
  0x86   :  { %255 = vpow2.f32 %v60_v25 }
  0x8c   :  { %v256_v26 = vpop.eup %255 }
  0x8d   :  { %180 = vmatmul.f32.vlgmr.msra.gmra.mxu0 %v256_v26 }
 0x10a   :  { %v181_v27 = vpop.f32.mrf.mxu0 }
 0x10b   :  { %v184_v28 = vmax.f32 %v181_v27, 1e-37 }
 0x10d   :  { %257 = vlog2.f32 %v184_v28 }
 0x113   :  { %v258_v30 = vpop.eup %257 }
 0x114   :  { %v186_v32 = vmul.f32 0.6931472, %v258_v30 }
 0x116   :  { %v189_v33 = vsub.f32 %v188_v31, %v186_v32 }
 0x118   :  { %v190_v34 = vmul.f32 1.442695, %v189_v33  ;;  %v194_v38 = vsub.f32 0.0, %v189_v33 }
 0x11a   :  { %259 = vpow2.f32 %v190_v34 }
 0x120   :  { %v260_v35 = vpop.eup %259 }
 0x121   :  { %v192_v36 = vsub.f32 1.0, %v260_v35 }
 0x123   :  { %v193_v37 = vmax.f32 %v192_v36, 0.0 }
 0x125   :  { %v195_v40 = vmul.f32 %v194_v38, %v193_v37 }
 0x127   :  { %v197_v41 = vmul.f32 %v196_v39, %v195_v40 }
 0x129   :  { %199 = vst.msk [vmem:[#allocation8] sm:$0xff] %vm198_vm0, %v197_v41 }
 0x12a   :  { %210 = dma.vmem_to_hbm [thread:$0]  %s206_s2, 128, %s208_s28, [#allocation4]  }
 0x12b   :  { %361 = dma.done.wait [#allocation4], 128  }
 0x12c   :  { %362 = vsyncadd [#allocation4], 4294967168 }
 0x12d   :  { %215 = vsyncpa [#allocation3], 1 }
 0x12e   :  { %216 = vsyncpa [#allocation6], 1 }
 0x12f   :  { %217 = vsyncpa [#allocation4], 1 }

</bundles_post_ra>
